<compile_context>
chip_gen: v6e
topology: v6e:2x2x1
jax: 0.10.0
libtpu: 0.0.40
codegen_flags: <defaults>
</compile_context>

<pallas_src>
import math

import jax
import jax.numpy as jnp
import numpy as np
from jax.experimental import pallas as pl
from jax.experimental.pallas import tpu as pltpu


def _round_up(x: int, m: int) -> int:
    return (x + m - 1) // m * m


# --------------------------------------------------------------------------
# Kernels
# --------------------------------------------------------------------------
def _gcn_fused_reassoc_kernel(adj_ref, x_ref, w_ref, b_ref, o_ref, acc_ref):
    """out[i] = (sum_k adj[i,k] @ x[k]) @ W + b   (used when F_out >= F_in)."""
    k = pl.program_id(1)

    @pl.when(k == 0)
    def _():
        acc_ref[...] = jnp.zeros_like(acc_ref)

    # Accumulate AX = adj @ x in f32 (acc shape [tm, F_in_p]).
    acc_ref[...] += jnp.dot(
        adj_ref[...], x_ref[...], preferred_element_type=jnp.float32
    )

    @pl.when(k == pl.num_programs(1) - 1)
    def _():
        out = jnp.dot(
            acc_ref[...].astype(w_ref.dtype),
            w_ref[...],
            preferred_element_type=jnp.float32,
        )
        o_ref[...] = (out + b_ref[...]).astype(o_ref.dtype)


def _gcn_fused_direct_kernel(adj_ref, x_ref, w_ref, b_ref, o_ref, acc_ref):
    """out = sum_k adj[:,k] @ (x[k] @ W) + b.

    Only used when there is a single output-row tile, so x[k] @ W is never
    recomputed (multi-row-tile cases go through the two-stage path instead).
    """
    k = pl.program_id(1)

    @pl.when(k == 0)
    def _():
        acc_ref[...] = jnp.zeros_like(acc_ref)

    support = jnp.dot(x_ref[...], w_ref[...], preferred_element_type=jnp.float32)
    acc_ref[...] += jnp.dot(
        adj_ref[...],
        support.astype(adj_ref.dtype),
        preferred_element_type=jnp.float32,
    )

    @pl.when(k == pl.num_programs(1) - 1)
    def _():
        o_ref[...] = (acc_ref[...] + b_ref[...]).astype(o_ref.dtype)


def _support_kernel(x_ref, w_ref, o_ref):
    """support = x @ W  (row-tiled, weight resident)."""
    o_ref[...] = jnp.dot(
        x_ref[...], w_ref[...], preferred_element_type=jnp.float32
    ).astype(o_ref.dtype)


def _aggregate_kernel(adj_ref, s_ref, b_ref, o_ref, acc_ref):
    """out = sum_k adj[:,k] @ support[k] + b  (row-tiles x reduction tiles)."""
    k = pl.program_id(1)

    @pl.when(k == 0)
    def _():
        acc_ref[...] = jnp.zeros_like(acc_ref)

    acc_ref[...] += jnp.dot(
        adj_ref[...], s_ref[...], preferred_element_type=jnp.float32
    )

    @pl.when(k == pl.num_programs(1) - 1)
    def _():
        o_ref[...] = (acc_ref[...] + b_ref[...]).astype(o_ref.dtype)


# --------------------------------------------------------------------------
# Wrapper
# --------------------------------------------------------------------------
def graph_convolution(
    x,
    adj,
    weight,
    bias=None,
    *,
    row_tile: int = 256,       # output-row tile (multiple of 8)
    k_tile: int = 256,         # neighbour-reduction tile (multiple of 128)
    compute_dtype=None,        # e.g. jnp.bfloat16 on v6e/v7x; default: x.dtype
    vmem_limit_bytes: int = 48 * 1024 * 1024,
):
    """Pallas GCN layer:  adj @ (x @ weight) + bias.

    x:      [N, F_in]     adj: [N, N]     weight: [F_in, F_out]
    bias:   [F_out] or None
    returns [N, F_out] in x.dtype
    """
    n, f_in = x.shape
    assert adj.shape == (n, n)
    assert weight.shape[0] == f_in
    f_out = weight.shape[1]
    out_dtype = x.dtype

    if bias is None:
        bias = jnp.zeros((f_out,), dtype=jnp.float32)

    cdt = x.dtype if compute_dtype is None else compute_dtype

    # ---- pad to TPU-friendly shapes (lane-dense output, (8,128) blocks) ----
    fin_p = _round_up(f_in, 128)
    fout_p = _round_up(f_out, 128)

    n8 = _round_up(n, 8)
    if n8 <= row_tile and n8 <= k_tile:
        # Small graph: a single block along N in both roles.
        tm = tk = n8
    else:
        assert row_tile % 8 == 0 and k_tile % 128 == 0
        tm, tk = row_tile, k_tile
    n_rows_p = _round_up(n, tm)   # padded N in the output-row role
    n_cols_p = _round_up(n, tk)   # padded N in the neighbour-reduction role

    # Zero padding keeps the real [:n, :f_out] region exact.
    x_p = jnp.zeros((n_cols_p, fin_p), cdt).at[:n, :f_in].set(x.astype(cdt))
    adj_p = jnp.zeros((n_rows_p, n_cols_p), cdt).at[:n, :n].set(adj.astype(cdt))
    w_p = jnp.zeros((fin_p, fout_p), cdt).at[:f_in, :f_out].set(weight.astype(cdt))
    b_p = (
        jnp.zeros((1, fout_p), jnp.float32)
        .at[0, :f_out]
        .set(bias.astype(jnp.float32))
    )

    grid = (n_rows_p // tm, n_cols_p // tk)
    cparams_2d = pltpu.CompilerParams(
        dimension_semantics=("parallel", "arbitrary"),
        vmem_limit_bytes=vmem_limit_bytes,
    )

    # Reassociate when the projected width is not smaller than the input width:
    # the N^2 matmul then runs at width fin_p with a [tm, fin_p] accumulator.
    reassociate = fout_p >= fin_p

    if reassociate or grid[0] == 1:
        kernel = _gcn_fused_reassoc_kernel if reassociate else _gcn_fused_direct_kernel
        acc_shape = (tm, fin_p) if reassociate else (tm, fout_p)
        out_p = pl.pallas_call(
            kernel,
            out_shape=jax.ShapeDtypeStruct((n_rows_p, fout_p), out_dtype),
            grid=grid,
            in_specs=[
                pl.BlockSpec((tm, tk), lambda i, k: (i, k)),         # adj tile
                pl.BlockSpec((tk, fin_p), lambda i, k: (k, 0)),      # x tile
                pl.BlockSpec((fin_p, fout_p), lambda i, k: (0, 0)),  # weight (resident)
                pl.BlockSpec((1, fout_p), lambda i, k: (0, 0)),      # bias (resident)
            ],
            out_specs=pl.BlockSpec((tm, fout_p), lambda i, k: (i, 0)),
            scratch_shapes=[pltpu.VMEM(acc_shape, jnp.float32)],
            compiler_params=cparams_2d,
        )(adj_p, x_p, w_p, b_p)
    else:
        # F_in > F_out with multiple output-row tiles: compute support = x @ W
        # exactly once (the fused form would recompute it per row tile), then
        # run the tiled aggregation adj @ support + bias.
        support_p = pl.pallas_call(
            _support_kernel,
            out_shape=jax.ShapeDtypeStruct((n_cols_p, fout_p), cdt),
            grid=(n_cols_p // tk,),
            in_specs=[
                pl.BlockSpec((tk, fin_p), lambda r: (r, 0)),         # x row tile
                pl.BlockSpec((fin_p, fout_p), lambda r: (0, 0)),     # weight (resident)
            ],
            out_specs=pl.BlockSpec((tk, fout_p), lambda r: (r, 0)),
            compiler_params=pltpu.CompilerParams(
                dimension_semantics=("parallel",),
                vmem_limit_bytes=vmem_limit_bytes,
            ),
        )(x_p, w_p)

        out_p = pl.pallas_call(
            _aggregate_kernel,
            out_shape=jax.ShapeDtypeStruct((n_rows_p, fout_p), out_dtype),
            grid=grid,
            in_specs=[
                pl.BlockSpec((tm, tk), lambda i, k: (i, k)),         # adj tile
                pl.BlockSpec((tk, fout_p), lambda i, k: (k, 0)),     # support tile
                pl.BlockSpec((1, fout_p), lambda i, k: (0, 0)),      # bias (resident)
            ],
            out_specs=pl.BlockSpec((tm, fout_p), lambda i, k: (i, 0)),
            scratch_shapes=[pltpu.VMEM((tm, fout_p), jnp.float32)],
            compiler_params=cparams_2d,
        )(adj_p, support_p, b_p)

    return out_p[:n, :f_out]


# --------------------------------------------------------------------------
# Self-test
# --------------------------------------------------------------------------
def _ref64(x, adj, weight, bias):
    """Exact (float64, module-order) reference: adj @ (x @ W) + b."""
    x64 = np.asarray(x, np.float64)
    a64 = np.asarray(adj, np.float64)
    w64 = np.asarray(weight, np.float64)
    b64 = np.asarray(bias, np.float64)
    return a64 @ (x64 @ w64) + b64


if __name__ == "__main__":
    key = jax.random.PRNGKey(0)

    def make_case(key, n, f_in, f_out):
        k_x, k_adj, k_w, k_b = jax.random.split(key, 4)
        stdv = 1.0 / math.sqrt(f_out)  # mirrors reset_parameters()
        weight = jax.random.uniform(
            k_w, (f_in, f_out), jnp.float32, minval=-stdv, maxval=stdv
        )
        bias = jax.random.uniform(
            k_b, (f_out,), jnp.float32, minval=-stdv, maxval=stdv
        )
        x = jax.random.normal(k_x, (n, f_in), jnp.float32)
        a_raw = jax.random.uniform(k_adj, (n, n), jnp.float32)
        adj = (a_raw + a_raw.T) / (2.0 * n)  # symmetric, roughly normalized
        return x, adj, weight, bias

    k1, k2, k3, k4 = jax.random.split(key, 4)

    # Tolerances reflect TPU MXU default precision (f32 accumulate).
    TOL_F32 = dict(atol=1e-2, rtol=1e-2)
    TOL_BF16 = dict(atol=5e-2, rtol=5e-2)

    # 1) Module-sized case (F_out > F_in -> fused re-associated path).
    N, F_IN, F_OUT = 16, 32, 64
    x, adj, weight, bias = make_case(k1, N, F_IN, F_OUT)
    out = jax.block_until_ready(graph_convolution(x, adj, weight, bias))
    assert out.shape == (N, F_OUT)
    assert np.allclose(np.asarray(out), _ref64(x, adj, weight, bias), **TOL_F32)

    # 1b) Same case with bf16 operands / f32 accumulate (v6e/v7x fast path).
    out_bf16 = jax.block_until_ready(
        graph_convolution(x, adj, weight, bias, compute_dtype=jnp.bfloat16)
    )
    assert np.allclose(
        np.asarray(out_bf16), _ref64(x, adj, weight, bias), **TOL_BF16
    )

    # 2) F_in > F_out, single row tile -> fused direct adj @ (x @ W) path.
    x2, adj2, w2, b2 = make_case(k2, 16, 256, 32)
    out2 = jax.block_until_ready(graph_convolution(x2, adj2, w2, b2))
    assert out2.shape == (16, 32)
    assert np.allclose(np.asarray(out2), _ref64(x2, adj2, w2, b2), **TOL_F32)

    # 3) Larger N, F_out >= F_in -> fused re-associated path with tiled grid
    #    (N=384 -> padded 512, 256x256 tiles, grid (2,2)).
    x3, adj3, w3, b3 = make_case(k3, 384, 32, 64)
    out3 = jax.block_until_ready(graph_convolution(x3, adj3, w3, b3))
    assert out3.shape == (384, 64)
    assert np.allclose(np.asarray(out3), _ref64(x3, adj3, w3, b3), **TOL_F32)

    # 4) Larger N with F_in > F_out -> two-stage path (support computed once,
    #    then tiled aggregation); exercises both pallas_calls.
    x4, adj4, w4, b4 = make_case(k4, 384, 256, 32)
    out4 = jax.block_until_ready(graph_convolution(x4, adj4, w4, b4))
    assert out4.shape == (384, 32)
    assert np.allclose(np.asarray(out4), _ref64(x4, adj4, w4, b4), **TOL_F32)

    print("KERNEL_OK")
</pallas_src>

<mosaic_0001>
module attributes {stable_mosaic.version = 11 : i64} {
  func.func @_gcn_fused_reassoc_kernel(%arg0: i32, %arg1: i32, %arg2: memref<16x16xf32, #tpu.memory_space<vmem>>, %arg3: memref<16x128xf32, #tpu.memory_space<vmem>>, %arg4: memref<128x128xf32, #tpu.memory_space<vmem>>, %arg5: memref<1x128xf32, #tpu.memory_space<vmem>>, %arg6: memref<16x128xf32, #tpu.memory_space<vmem>>, %arg7: memref<16x128xf32, #tpu.memory_space<vmem>>) attributes {dimension_semantics = [#tpu.dimension_semantics<parallel>, #tpu.dimension_semantics<arbitrary>], iteration_bounds = array<i64: 1, 1>, scalar_prefetch = 0 : i64, scratch_operands = 1 : i64, tpu.core_type = #tpu.core_type<tc>, window_params = [{transform_indices = @transform_0, window_bounds = array<i64: 16, 16>}, {transform_indices = @transform_1, window_bounds = array<i64: 16, 128>}, {pipeline_mode = #tpu.pipeline_mode<synchronous>, transform_indices = @transform_2, window_bounds = array<i64: 128, 128>}, {pipeline_mode = #tpu.pipeline_mode<synchronous>, transform_indices = @transform_3, window_bounds = array<i64: 1, 128>}, {transform_indices = @transform_4, window_bounds = array<i64: 16, 128>}]} {
    %c0_i32 = arith.constant 0 : i32
    %0 = arith.cmpi eq, %arg1, %c0_i32 : i32
    %1 = arith.extui %0 : i1 to i32
    %c0_i32_0 = arith.constant 0 : i32
    %2 = arith.cmpi ne, %1, %c0_i32_0 : i32
    scf.if %2 {
      %cst_10 = arith.constant 0.000000e+00 : f32
      %12 = vector.broadcast %cst_10 : f32 to vector<16x128xf32>
      %c0_11 = arith.constant 0 : index
      %c0_12 = arith.constant 0 : index
      %13 = vector.load %arg7[%c0_11, %c0_12] : memref<16x128xf32, #tpu.memory_space<vmem>>, vector<16x128xf32>
      tpu.vector_store %arg7[%c0_11, %c0_12], %12 {strides = array<i32>} : memref<16x128xf32, #tpu.memory_space<vmem>>, vector<16x128xf32>,
    } else {
    }
    %c0 = arith.constant 0 : index
    %c0_1 = arith.constant 0 : index
    %3 = vector.load %arg7[%c0, %c0_1] : memref<16x128xf32, #tpu.memory_space<vmem>>, vector<16x128xf32>
    %c0_2 = arith.constant 0 : index
    %c0_3 = arith.constant 0 : index
    %4 = vector.load %arg2[%c0_2, %c0_3] : memref<16x16xf32, #tpu.memory_space<vmem>>, vector<16x16xf32>
    %c0_4 = arith.constant 0 : index
    %c0_5 = arith.constant 0 : index
    %5 = vector.load %arg3[%c0_4, %c0_5] : memref<16x128xf32, #tpu.memory_space<vmem>>, vector<16x128xf32>
    %cst = arith.constant dense<0.000000e+00> : vector<16x128xf32>
    %6 = tpu.matmul %4, %5, %cst {dimension_numbers = #tpu.dot_dimension_numbers<[1], [0], [0], [1], [0, 0, 1, 1], [], []>} : vector<16x16xf32>, vector<16x128xf32>, vector<16x128xf32> -> vector<16x128xf32>
    %7 = arith.addf %3, %6 : vector<16x128xf32>
    %c0_6 = arith.constant 0 : index
    %c0_7 = arith.constant 0 : index
    %8 = vector.load %arg7[%c0_6, %c0_7] : memref<16x128xf32, #tpu.memory_space<vmem>>, vector<16x128xf32>
    tpu.vector_store %arg7[%c0_6, %c0_7], %7 {strides = array<i32>} : memref<16x128xf32, #tpu.memory_space<vmem>>, vector<16x128xf32>,
    %c0_i32_8 = arith.constant 0 : i32
    %9 = arith.cmpi eq, %arg1, %c0_i32_8 : i32
    %10 = arith.extui %9 : i1 to i32
    %c0_i32_9 = arith.constant 0 : i32
    %11 = arith.cmpi ne, %10, %c0_i32_9 : i32
    scf.if %11 {
      %c0_10 = arith.constant 0 : index
      %c0_11 = arith.constant 0 : index
      %12 = vector.load %arg7[%c0_10, %c0_11] : memref<16x128xf32, #tpu.memory_space<vmem>>, vector<16x128xf32>
      %c0_12 = arith.constant 0 : index
      %c0_13 = arith.constant 0 : index
      %13 = vector.load %arg4[%c0_12, %c0_13] : memref<128x128xf32, #tpu.memory_space<vmem>>, vector<128x128xf32>
      %cst_14 = arith.constant dense<0.000000e+00> : vector<16x128xf32>
      %14 = tpu.matmul %12, %13, %cst_14 {dimension_numbers = #tpu.dot_dimension_numbers<[1], [0], [0], [1], [0, 0, 1, 1], [], []>} : vector<16x128xf32>, vector<128x128xf32>, vector<16x128xf32> -> vector<16x128xf32>
      %c0_15 = arith.constant 0 : index
      %c0_16 = arith.constant 0 : index
      %15 = vector.load %arg5[%c0_15, %c0_16] : memref<1x128xf32, #tpu.memory_space<vmem>>, vector<1x128xf32>
      %16 = vector.broadcast %15 : vector<1x128xf32> to vector<16x128xf32>
      %17 = arith.addf %14, %16 : vector<16x128xf32>
      %c0_17 = arith.constant 0 : index
      %c0_18 = arith.constant 0 : index
      %18 = vector.load %arg6[%c0_17, %c0_18] : memref<16x128xf32, #tpu.memory_space<vmem>>, vector<16x128xf32>
      tpu.vector_store %arg6[%c0_17, %c0_18], %17 {strides = array<i32>} : memref<16x128xf32, #tpu.memory_space<vmem>>, vector<16x128xf32>,
    } else {
    }
    return
  }
  func.func @transform_0(%arg0: i32, %arg1: i32) -> (i32, i32) {
    %c0_i32 = arith.constant 0 : i32
    return %arg0, %arg1 : i32, i32
  }
  func.func @transform_1(%arg0: i32, %arg1: i32) -> (i32, i32) {
    %c0_i32 = arith.constant 0 : i32
    %c0_i32_0 = arith.constant 0 : i32
    return %arg1, %c0_i32 : i32, i32
  }
  func.func @transform_2(%arg0: i32, %arg1: i32) -> (i32, i32) {
    %c0_i32 = arith.constant 0 : i32
    %c0_i32_0 = arith.constant 0 : i32
    %c0_i32_1 = arith.constant 0 : i32
    return %c0_i32, %c0_i32_0 : i32, i32
  }
  func.func @transform_3(%arg0: i32, %arg1: i32) -> (i32, i32) {
    %c0_i32 = arith.constant 0 : i32
    %c0_i32_0 = arith.constant 0 : i32
    %c0_i32_1 = arith.constant 0 : i32
    return %c0_i32, %c0_i32_0 : i32, i32
  }
  func.func @transform_4(%arg0: i32, %arg1: i32) -> (i32, i32) {
    %c0_i32 = arith.constant 0 : i32
    %c0_i32_0 = arith.constant 0 : i32
    return %arg0, %c0_i32 : i32, i32
  }
}

</mosaic_0001>

<bundles_post_ra>
// kernel: tpu_custom_call.1
= control target key start
LH: loop header
LB: loop body
LE: loop exit
PB: predicated region body
PF: predicated region fallthrough
CT: control target
= control target key end

     0   :  { %9 = vsyncpa [#allocation4], 0  ;;  %s499_s0 = inlined_call_operand.hbm [shape: f32[16,16], index: 0, kind: input, shape index: {}]   ;;  %s500_s1 = inlined_call_operand.hbm [shape: f32[16,128], index: 1, kind: input, shape index: {}]   ;;  %s501_s2 = inlined_call_operand.hbm [shape: f32[128,128], index: 2, kind: input, shape index: {}]   ;;  %s502_s3 = inlined_call_operand.vmem [shape: f32[1,128], index: 3, kind: input, shape index: {}]   ;;  %s503_s4 = inlined_call_operand.hbm [shape: f32[16,128], index: 4, kind: output, shape index: {}]  }
   0x1   :  { %10 = vsyncpa [#allocation7], 0 }
   0x2   :  { %11 = vsyncpa [#allocation5], 0  ;;  %s439_s15 = smov [#allocation6]   ;;  %s440_s17 = smov [#allocation3]  }
   0x3   :  { %s29_s16 = sshll.u32 %s439_s15, 4  ;;  %s17_s18 = sshll.u32 %s440_s17, 4  ;;  %s30_s16 = int_to_ptr.vmem [resolvable:$true] %s29_s16  ;;  %s18_s18 = int_to_ptr.vmem [resolvable:$true] %s17_s18 }
   0x4   :  { %s361_s19 = scalar_lea.vmem %s30_s16, 256  ;;  %p366_p1 = scmp.lt.s32.totalorder %s30_s16, %s30_s16 }
   0x5   :  { %p362_p0 = scmp.ne.s32.totalorder %s30_s16, %s361_s19  ;;  %p367_p2 = scmp.lt.s32.totalorder %s361_s19, %s361_s19 }
   0x7   :  { %p368_p3 = por %p367_p2, %p366_p1 }
   0x9   :  { %p369_p4 = pnand %p368_p3, %p362_p0 }
   0xb   :  { %372 = shalt.err (!%p369_p4)
}
   0xc   :  { %s441_s20 = smov 128   ;;  %s442_s21 = smov 8  }
   0xd   :  { %35 = dma.hbm_to_vmem [thread:$0]  %s500_s1, 256, %s30_s16, [#allocation7], %s441_s20, %s441_s20, %s442_s21  }
   0xe   :  { %s381_s24 = scalar_lea.vmem %s18_s18, 256  ;;  %p386_p6 = scmp.lt.s32.totalorder %s18_s18, %s18_s18 }
   0xf   :  { %p382_p5 = scmp.ne.s32.totalorder %s18_s18, %s381_s24  ;;  %p387_p7 = scmp.lt.s32.totalorder %s381_s24, %s381_s24 }
  0x11   :  { %p388_p8 = por %p387_p7, %p386_p6 }
  0x13   :  { %p389_p9 = pnand %p388_p8, %p382_p5 }
  0x15   :  { %392 = shalt.err (!%p389_p9)
}
  0x16   :  { %23 = dma.hbm_to_vmem [thread:$0]  %s499_s0, 256, %s18_s18, [#allocation4], %s441_s20, %s441_s20, %s442_s21  }
  0x17   :  { %s443_s27 = smov [#allocation8]  }
  0x18   :  { %s41_s28 = sshll.u32 %s443_s27, 4  ;;  %s42_s28 = int_to_ptr.vmem [resolvable:$true] %s41_s28 }
  0x19   :  { %s401_s29 = scalar_lea.vmem %s42_s28, 2048  ;;  %p406_p11 = scmp.lt.s32.totalorder %s42_s28, %s42_s28 }
  0x1a   :  { %p402_p10 = scmp.ne.s32.totalorder %s42_s28, %s401_s29  ;;  %p407_p12 = scmp.lt.s32.totalorder %s401_s29, %s401_s29 }
  0x1c   :  { %p408_p13 = por %p407_p12, %p406_p11 }
  0x1e   :  { %p409_p0 = pnand %p408_p13, %p402_p10 }
  0x20   :  { %412 = shalt.err (!%p409_p0)
}
  0x21   :  { %47 = dma.hbm_to_vmem [thread:$0]  %s501_s2, 2048, %s42_s28, [#allocation7], %s441_s20, %s441_s20, %s442_s21  }
  0x22   :  { %433 = dma.done.wait [#allocation4], 256  }
  0x23   :  { %434 = vsyncadd [#allocation4], 4294967040 }
  0x24   :  { %435 = dma.done.wait [#allocation7], 2304  }
  0x25   :  { %436 = vsyncadd [#allocation7], 4294964992  ;;  %vm71_vm0 = vcmask 130048   ;;  %v70_v0 = vld [vmem:[#allocation6 + $0x8] sm:$0xff]  ;;  %v69_v1 = vld [vmem:[#allocation6] sm:$0xff]  ;;  %s444_s5 = smov [#allocation9]  }
  0x26   :  { %v67_v2 = vld [vmem:[#allocation3] sm:$0xff]  ;;  %305 = vmatprep.subr.mxu0 %v70_v0  ;;  %v177_v3 = vld [vmem:[#allocation8 + $0x78] sm:$0xff]  ;;  %v176_v4 = vld [vmem:[#allocation8 + $0x70] sm:$0xff]  ;;  %s267_s6 = sshll.u32 %s444_s5, 4  ;;  %s268_s6 = int_to_ptr.vmem [resolvable:$true] %s267_s6 }
  0x27   :  { %309 = vmatprep.mubr.msk.f32.mxu0 %vm71_vm0, %v67_v2  ;;  %306 = vmatpush3.msra.mxu0 %v70_v0  ;;  %v68_v5 = vld [vmem:[#allocation3 + $0x8] sm:$0xff]  ;;  %v174_v7 = vld [vmem:[#allocation8 + $0x60] sm:$0xff]  ;;  %v173_v8 = vld [vmem:[#allocation8 + $0x58] sm:$0xff]  ;;  %s413_s7 = scalar_lea.vmem %s268_s6, 256  ;;  %p418_p2 = scmp.lt.s32.totalorder %s268_s6, %s268_s6 }
  0x28   :  { %312 = vmatprep.subr.mxu1 %v177_v3  ;;  %307 = vmatprep.subr.mxu0 %v69_v1  ;;  %v175_v6 = vld [vmem:[#allocation8 + $0x68] sm:$0xff]  ;;  %v172_v9 = vld [vmem:[#allocation8 + $0x50] sm:$0xff]  ;;  %v170_v11 = vld [vmem:[#allocation8 + $0x40] sm:$0xff]  ;;  %p414_p1 = scmp.ne.s32.totalorder %s268_s6, %s413_s7  ;;  %p419_p3 = scmp.lt.s32.totalorder %s413_s7, %s413_s7 }
  0x29   :  { %313 = vmatpush3.msra.mxu1 %v177_v3  ;;  %308 = vmatpush3.msra.mxu0 %v69_v1  ;;  %v171_v10 = vld [vmem:[#allocation8 + $0x48] sm:$0xff]  ;;  %v169_v12 = vld [vmem:[#allocation8 + $0x38] sm:$0xff]  ;;  %v168_v13 = vld [vmem:[#allocation8 + $0x30] sm:$0xff] }
  0x2a   :  { %314 = vmatprep.subr.mxu1 %v176_v4  ;;  %310 = vmatmul.mubr.msk.f32.vlgmr.msra.gmra.mxu0 %vm71_vm0, %v68_v5  ;;  %v167_v14 = vld [vmem:[#allocation8 + $0x28] sm:$0xff]  ;;  %v166_v15 = vld [vmem:[#allocation8 + $0x20] sm:$0xff]  ;;  %v165_v16 = vld [vmem:[#allocation8 + $0x18] sm:$0xff]  ;;  %p420_p4 = por %p419_p3, %p418_p2 }
  0x2b   :  { %315 = vmatpush3.msra.mxu1 %v176_v4  ;;  %v164_v17 = vld [vmem:[#allocation8 + $0x10] sm:$0xff]  ;;  %v163_v18 = vld [vmem:[#allocation8 + $0x8] sm:$0xff]  ;;  %v162_v19 = vld [vmem:[#allocation8] sm:$0xff] }
  0x2c   :  { %316 = vmatprep.subr.mxu1 %v175_v6  ;;  %v282_v22 = vld [vmem:[%s502_s3] ss:$0 sm:$0xff]  ;;  %p421_p5 = pnand %p420_p4, %p414_p1 }
  0x2d   :  { %317 = vmatpush3.msra.mxu1 %v175_v6 }
  0x2e   :  { %318 = vmatprep.subr.mxu1 %v174_v7 }
  0x2f   :  { %319 = vmatpush3.msra.mxu1 %v174_v7 }
  0x30   :  { %320 = vmatprep.subr.mxu1 %v173_v8 }
  0x31   :  { %321 = vmatpush3.msra.mxu1 %v173_v8 }
  0x32   :  { %322 = vmatprep.subr.mxu1 %v172_v9 }
  0x33   :  { %323 = vmatpush3.msra.mxu1 %v172_v9 }
  0x34   :  { %324 = vmatprep.subr.mxu1 %v171_v10 }
  0x35   :  { %325 = vmatpush3.msra.mxu1 %v171_v10 }
  0x36   :  { %326 = vmatprep.subr.mxu1 %v170_v11 }
  0x37   :  { %327 = vmatpush3.msra.mxu1 %v170_v11 }
  0x38   :  { %328 = vmatprep.subr.mxu1 %v169_v12 }
  0x39   :  { %329 = vmatpush3.msra.mxu1 %v169_v12 }
  0x3a   :  { %330 = vmatprep.subr.mxu1 %v168_v13 }
  0x3b   :  { %331 = vmatpush3.msra.mxu1 %v168_v13 }
  0x3c   :  { %332 = vmatprep.subr.mxu1 %v167_v14 }
  0x3d   :  { %333 = vmatpush3.msra.mxu1 %v167_v14 }
  0x3e   :  { %334 = vmatprep.subr.mxu1 %v166_v15 }
  0x3f   :  { %335 = vmatpush3.msra.mxu1 %v166_v15 }
  0x40   :  { %336 = vmatprep.subr.mxu1 %v165_v16 }
  0x41   :  { %337 = vmatpush3.msra.mxu1 %v165_v16 }
  0x42   :  { %338 = vmatprep.subr.mxu1 %v164_v17 }
  0x43   :  { %339 = vmatpush3.msra.mxu1 %v164_v17 }
  0x44   :  { %340 = vmatprep.subr.mxu1 %v163_v18 }
  0x45   :  { %341 = vmatpush3.msra.mxu1 %v163_v18 }
  0x46   :  { %342 = vmatprep.subr.mxu1 %v162_v19 }
  0x47   :  { %343 = vmatpush3.msra.mxu1 %v162_v19 }
  0xea   :  { %v311_v20 = vpop.f32.mrf.mxu0 }
  0xec   :  { %v144_v21 = vpop.f32.mrf.mxu0 }
  0xed   :  { %344 = vmatprep.mubr.f32.mxu1 %v144_v21 }
  0xee   :  { %345 = vmatmul.mubr.f32.vlgmr.msra.gmra.mxu1 %v311_v20 }
 0x1ae   :  { %v346_v23 = vpop.f32.mrf.mxu1 }
 0x1af   :  { %v257_v24 = vadd.f32 %v346_v23, %v282_v22 }
 0x1b0   :  { %v251_v25 = vpop.f32.mrf.mxu1 }
 0x1b1   :  { %261 = vst [vmem:[#allocation9 + $0x8] sm:$0xff] %v257_v24  ;;  %v252_v26 = vadd.f32 %v282_v22, %v251_v25 }
 0x1b3   :  { %260 = vst [vmem:[#allocation9] sm:$0xff] %v252_v26 }
 0x1b4   :  { %424 = shalt.err (!%p421_p5)
}
 0x1b5   :  { %273 = dma.vmem_to_hbm [thread:$0]  %s268_s6, 256, %s503_s4, [#allocation5], %s441_s20, %s441_s20, %s442_s21  }
 0x1b6   :  { %437 = dma.done.wait [#allocation5], 256  }
 0x1b7   :  { %438 = vsyncadd [#allocation5], 4294967040 }
 0x1b8   :  { %277 = vsyncpa [#allocation4], 1 }
 0x1b9   :  { %278 = vsyncpa [#allocation7], 1 }
 0x1ba   :  { %279 = vsyncpa [#allocation5], 1 }

</bundles_post_ra>
